<compile_context>
chip_gen: v7x
topology: tpu7x:2x2x1
jax: 0.10.0
libtpu: 0.0.40
codegen_flags: <defaults>
</compile_context>

<pallas_src>
import jax
import jax.numpy as jnp
from jax.experimental import pallas as pl
from jax.experimental.pallas import tpu as pltpu

LANE = 128
SUBLANE = 8


def _round_up(x: int, m: int) -> int:
    return (x + m - 1) // m * m


def _cdiv(a: int, b: int) -> int:
    return -(-a // b)


# ---------------------------------------------------------------------------
# Fused kernel: phi-MLP -> masked segment pooling (MXU) -> classifier head.
# ---------------------------------------------------------------------------
def _make_kernel(num_layers: int, pulling_op: str, matmul_dtype,
                 pairs_per_tile: int, s_pad: int):
    """Kernel over grid (pair_group,).

    ref order: x, seg, w0, b0, ..., w_{L-1}, b_{L-1}, wc, bc,
               combined_out, logits_out
    """

    def kernel(*refs):
        x_ref = refs[0]                               # (rows, F) f32 set rows
        seg_ref = refs[1]                             # (P, rows) f32 block-diag 0/1
        wb = refs[2:2 + 2 * num_layers]               # resident weights / biases
        wc_ref = refs[2 + 2 * num_layers]             # (Ep, Cp) f32
        bc_ref = refs[3 + 2 * num_layers]             # (1, Cp) f32
        comb_ref = refs[4 + 2 * num_layers]           # (1, P, Ep)
        logit_ref = refs[5 + 2 * num_layers]          # (1, P, Cp)

        x = x_ref[...]                                # (rows, F) f32
        mask = (x[:, 0:1] != 0.0).astype(jnp.float32)  # (rows, 1) valid-row mask

        # Layer 0 on the MXU (contraction depth F=2).  Wasted idle MXU rows are
        # free; this keeps the VALU slots for mask/ReLU/casts and avoids the
        # per-feature lane broadcasts of an FMA path.
        h = jnp.dot(x, wb[0][...], preferred_element_type=jnp.float32) + wb[1][...]
        if num_layers > 1:
            h = jnp.maximum(h, 0.0)

        # Layers >= 1: lane-dense (128-multiple) MXU matmuls, bf16 operands,
        # f32 accumulation.  Bias add / ReLU stay f32.
        for layer in range(1, num_layers):
            w = wb[2 * layer][...]                    # (Kp, Np) matmul_dtype
            b = wb[2 * layer + 1][...]                # (1, Np) f32
            h = jnp.dot(h.astype(matmul_dtype), w,
                        preferred_element_type=jnp.float32) + b
            if layer < num_layers - 1:
                h = jnp.maximum(h, 0.0)

        # Masked pooling over each pair's set as an MXU segment matmul.
        if pulling_op in ("mean", "sum"):
            num = jnp.dot(seg_ref[...], h * mask,
                          preferred_element_type=jnp.float32)      # (P, Hp)
            if pulling_op == "mean":
                den = jnp.dot(seg_ref[...], mask,
                              preferred_element_type=jnp.float32)  # (P, 1)
                pooled = num / jnp.maximum(den, 1.0)   # exact divide; guard empty sets
            else:
                pooled = num
        elif pulling_op == "max":
            hm = jnp.where(mask > 0.0, h, -jnp.inf)
            pooled = jnp.max(hm.reshape(pairs_per_tile, s_pad, h.shape[-1]), axis=1)
        else:
            raise ValueError(f"unknown pulling_op: {pulling_op}")

        comb_ref[0] = pooled.astype(comb_ref.dtype)

        # Fused classifier head Linear(E, 2): no second kernel launch and no
        # HBM write + re-read of `combined`.
        logits = (jnp.dot(pooled, wc_ref[...], preferred_element_type=jnp.float32)
                  + bc_ref[...])
        logit_ref[0] = logits.astype(logit_ref.dtype)

    return kernel


# ---------------------------------------------------------------------------
# DeepClassifier.forward
# ---------------------------------------------------------------------------
def deep_classifier_forward(s, t, pair_degree, fe_params, cls_params,
                            pulling_op: str = "mean", *,
                            target_rows: int = 1024,
                            matmul_dtype=jnp.bfloat16):
    """Returns (out logits (N, 2), pred (N,), combined (N, n_experiments))."""
    del pair_degree  # TODO(synk): unused by the stand-in base model.

    # torch.reshape(s, (-1, s.shape[2], s.shape[3])) / same for t, then treat the
    # (s, t) pair as one element set per pair.
    flat_s = s.reshape(-1, s.shape[2], s.shape[3])
    flat_t = t.reshape(-1, t.shape[2], t.shape[3])
    x = jnp.concatenate([flat_s, flat_t], axis=1).astype(jnp.float32)   # (N, 2S, F)

    N, S2, F = x.shape
    num_layers = len(fe_params)
    E = fe_params[-1][0].shape[1]                  # n_experiments
    C = cls_params[0].shape[1]                     # n classes (2)
    Ep = _round_up(E, LANE)
    Cp = _round_up(C, LANE)

    # ---- tiling: batch P pairs per grid step --------------------------------
    s_pad = _round_up(S2, SUBLANE)                 # set rows per pair (mult of 8)
    P = max(1, min(target_rows // s_pad, N))       # pairs per grid step
    if N >= 2:
        P = min(P, _cdiv(N, 2))                    # >= 2 steps -> feed both v7x TCs
    n_groups = _cdiv(N, P)
    n_pad = n_groups * P
    rows = P * s_pad                               # rows per step (multiple of 8)

    # ---- wrapper-side layout plumbing ---------------------------------------
    # Pad pair / set axes with zero rows (the in-kernel mask drops them; padded
    # pairs pool to 0) and flatten to a 2-D row-tiled slab.
    # Note: the (rows, F=2) block lane-pads to 128 in VMEM (~rows*512 B per
    # buffer); accepted knowingly at these tile sizes.
    xp = jnp.zeros((n_pad, s_pad, F), jnp.float32).at[:N, :S2, :].set(x)
    x2d = xp.reshape(n_pad * s_pad, F)

    # Resident block-diagonal 0/1 segment matrix for the MXU pooling matmul.
    seg = (jnp.arange(rows)[None, :] // s_pad
           == jnp.arange(P)[:, None]).astype(jnp.float32)          # (P, rows)

    # Zero-pad hidden dims to 128-lane multiples; ship layers >= 1 in bf16
    # (matmul operands only).  Padded columns stay exactly 0.
    flat_args = [x2d, seg]
    weight_bytes = int(seg.size) * 4
    hp_sizes = []
    in_dim = F
    for li, (w, b) in enumerate(fe_params):
        ip = in_dim if li == 0 else _round_up(in_dim, LANE)
        op = _round_up(w.shape[1], LANE)
        wp = jnp.zeros((ip, op), jnp.float32).at[:w.shape[0], :w.shape[1]].set(w)
        bp = jnp.zeros((1, op), jnp.float32).at[:, :b.shape[1]].set(b)
        if li > 0:
            wp = wp.astype(matmul_dtype)
        flat_args += [wp, bp]
        weight_bytes += int(wp.size) * wp.dtype.itemsize + int(bp.size) * 4
        hp_sizes.append(op)
        in_dim = w.shape[1]
    wc, bc = cls_params
    wcp = jnp.zeros((Ep, Cp), jnp.float32).at[:E, :C].set(wc)
    bcp = jnp.zeros((1, Cp), jnp.float32).at[:, :C].set(bc)
    flat_args += [wcp, bcp]
    weight_bytes += int(wcp.size) * 4 + int(bcp.size) * 4

    # ---- specs ----------------------------------------------------------------
    in_specs = [pl.BlockSpec((rows, F), lambda i: (i, 0))]
    for a in flat_args[1:]:
        # Constant index_map -> fetched once, resident in VMEM across all steps.
        in_specs.append(pl.BlockSpec(a.shape, lambda i: (0, 0)))

    # Explicit VMEM budget (double-buffered inputs + activation temporaries),
    # comfortably under 32 MiB on every generation (v7x physical is 64 MiB).
    vmem = (2 * rows * LANE * 4                       # lane-padded x tile x2 buffers
            + 2 * weight_bytes                        # resident weights (2 buffers)
            + 2 * _round_up(P, SUBLANE) * (Ep + Cp) * 4   # output tiles
            + 2 * rows * sum(hp_sizes) * 4)           # activation temporaries
    vmem_limit = int(min(max(2 * vmem, 8 << 20), 32 << 20))

    kernel = _make_kernel(num_layers, pulling_op, matmul_dtype, P, s_pad)

    combined_p, logits_p = pl.pallas_call(
        kernel,
        out_shape=(jax.ShapeDtypeStruct((n_groups, P, Ep), jnp.float32),
                   jax.ShapeDtypeStruct((n_groups, P, Cp), jnp.float32)),
        grid_spec=pltpu.PrefetchScalarGridSpec(
            num_scalar_prefetch=0,
            grid=(n_groups,),
            in_specs=in_specs,
            out_specs=(pl.BlockSpec((1, P, Ep), lambda i: (i, 0, 0)),
                       pl.BlockSpec((1, P, Cp), lambda i: (i, 0, 0)))),
        compiler_params=pltpu.CompilerParams(
            dimension_semantics=("parallel",),
            vmem_limit_bytes=vmem_limit),
    )(*flat_args)

    combined = combined_p.reshape(n_pad, Ep)[:N, :E]
    out = logits_p.reshape(n_pad, Cp)[:N, :C]
    pred = jnp.argmax(out, axis=1)                  # trivial 2-class argmax (wrapper)
    return out, pred, combined


# ---------------------------------------------------------------------------
# Params / reference / test
# ---------------------------------------------------------------------------
def _init_linear(key, fan_in, fan_out):
    kw, kb = jax.random.split(key)
    bound = 1.0 / jnp.sqrt(jnp.float32(fan_in))
    w = jax.random.uniform(kw, (fan_in, fan_out), jnp.float32, -bound, bound)
    b = jax.random.uniform(kb, (1, fan_out), jnp.float32, -bound, bound)
    return w, b


def init_params(key, feature_extractor_size, n_classes=2):
    sizes = [2] + list(feature_extractor_size)
    fe_params = []
    for i in range(len(sizes) - 1):
        key, k = jax.random.split(key)
        fe_params.append(_init_linear(k, sizes[i], sizes[i + 1]))
    key, k = jax.random.split(key)
    cls_params = _init_linear(k, sizes[-1], n_classes)
    return fe_params, cls_params


def reference_forward(s, t, pair_degree, fe_params, cls_params,
                      pulling_op="mean", matmul_dtype=jnp.bfloat16):
    """Pure-JAX mirror of the kernel pipeline (same bf16 matmul operands)."""
    del pair_degree
    flat_s = s.reshape(-1, s.shape[2], s.shape[3])
    flat_t = t.reshape(-1, t.shape[2], t.shape[3])
    x = jnp.concatenate([flat_s, flat_t], axis=1).astype(jnp.float32)
    mask = (x[:, :, 0:1] != 0.0).astype(jnp.float32)
    h = x
    for i, (w, b) in enumerate(fe_params):
        if i == 0:
            h = jnp.einsum("nsf,fh->nsh", h, w) + b[0]
        else:
            h = jnp.einsum("nsf,fh->nsh", h.astype(matmul_dtype),
                           w.astype(matmul_dtype),
                           preferred_element_type=jnp.float32) + b[0]
        if i < len(fe_params) - 1:
            h = jnp.maximum(h, 0.0)
    if pulling_op == "mean":
        combined = jnp.sum(h * mask, axis=1) / jnp.maximum(jnp.sum(mask, axis=1), 1.0)
    elif pulling_op == "sum":
        combined = jnp.sum(h * mask, axis=1)
    elif pulling_op == "max":
        combined = jnp.max(jnp.where(mask > 0.0, h, -jnp.inf), axis=1)
    else:
        raise ValueError(pulling_op)
    wc, bc = cls_params
    out = combined @ wc + bc[0]
    pred = jnp.argmax(out, axis=1)
    return out, pred, combined


if __name__ == "__main__":
    B, E, S, F = 2, 4, 8, 2              # batch, pairs-per-batch, set size, feats
    feature_extractor_size = [32, 64]    # phi: 2 -> 32 -> ReLU -> 64 (= n_experiments)
    pulling_op = "mean"

    key = jax.random.PRNGKey(0)
    ks, kt, kp = jax.random.split(key, 3)
    s = jax.random.normal(ks, (B, E, S, F), dtype=jnp.float32)
    t = jax.random.normal(kt, (B, E, S, F), dtype=jnp.float32)
    # Zero the first feature of a few set elements so the mask drops them.
    s = s.at[:, :, -2:, 0].set(0.0)
    t = t.at[:, :, -1:, 0].set(0.0)
    pair_degree = jnp.zeros((B * E,), jnp.int32)   # unused by the stand-in base model

    fe_params, cls_params = init_params(kp, feature_extractor_size, n_classes=2)

    ref_out, ref_pred, ref_combined = reference_forward(
        s, t, pair_degree, fe_params, cls_params, pulling_op=pulling_op)

    N = B * E
    # target_rows=1024 -> P=4 pairs/step, 2 grid steps.
    # target_rows=48   -> P=3 pairs/step, pair-count padding (N=8 -> 9) exercised.
    for target_rows in (1024, 48):
        out, pred, combined = deep_classifier_forward(
            s, t, pair_degree, fe_params, cls_params,
            pulling_op=pulling_op, target_rows=target_rows)
        out, pred, combined = jax.block_until_ready((out, pred, combined))

        assert combined.shape == (N, feature_extractor_size[-1]), combined.shape
        assert out.shape == (N, 2), out.shape
        assert pred.shape == (N,), pred.shape
        assert jnp.allclose(combined, ref_combined, atol=1e-2, rtol=1e-2), (
            target_rows, float(jnp.max(jnp.abs(combined - ref_combined))))
        assert jnp.allclose(out, ref_out, atol=1e-2, rtol=1e-2), (
            target_rows, float(jnp.max(jnp.abs(out - ref_out))))
    print("KERNEL_OK")
</pallas_src>

<mosaic_0001>
module attributes {stable_mosaic.version = 11 : i64} {
  func.func @kernel(%arg0: i32, %arg1: memref<64x2xf32, #tpu.memory_space<vmem>>, %arg2: memref<4x64xf32, #tpu.memory_space<vmem>>, %arg3: memref<2x128xf32, #tpu.memory_space<vmem>>, %arg4: memref<1x128xf32, #tpu.memory_space<vmem>>, %arg5: memref<128x128xbf16, #tpu.memory_space<vmem>>, %arg6: memref<1x128xf32, #tpu.memory_space<vmem>>, %arg7: memref<128x128xf32, #tpu.memory_space<vmem>>, %arg8: memref<1x128xf32, #tpu.memory_space<vmem>>, %arg9: memref<1x4x128xf32, #tpu.memory_space<vmem>>, %arg10: memref<1x4x128xf32, #tpu.memory_space<vmem>>) attributes {dimension_semantics = [#tpu.dimension_semantics<parallel>], iteration_bounds = array<i64: 2>, scalar_prefetch = 0 : i64, scratch_operands = 0 : i64, tpu.core_type = #tpu.core_type<tc>, window_params = [{transform_indices = @transform_0, window_bounds = array<i64: 64, 2>}, {pipeline_mode = #tpu.pipeline_mode<synchronous>, transform_indices = @transform_1, window_bounds = array<i64: 4, 64>}, {pipeline_mode = #tpu.pipeline_mode<synchronous>, transform_indices = @transform_2, window_bounds = array<i64: 2, 128>}, {pipeline_mode = #tpu.pipeline_mode<synchronous>, transform_indices = @transform_3, window_bounds = array<i64: 1, 128>}, {pipeline_mode = #tpu.pipeline_mode<synchronous>, transform_indices = @transform_4, window_bounds = array<i64: 128, 128>}, {pipeline_mode = #tpu.pipeline_mode<synchronous>, transform_indices = @transform_5, window_bounds = array<i64: 1, 128>}, {pipeline_mode = #tpu.pipeline_mode<synchronous>, transform_indices = @transform_6, window_bounds = array<i64: 128, 128>}, {pipeline_mode = #tpu.pipeline_mode<synchronous>, transform_indices = @transform_7, window_bounds = array<i64: 1, 128>}, {transform_indices = @transform_8, window_bounds = array<i64: 1, 4, 128>}, {transform_indices = @transform_9, window_bounds = array<i64: 1, 4, 128>}]} {
    %c0 = arith.constant 0 : index
    %c0_0 = arith.constant 0 : index
    %0 = vector.load %arg1[%c0, %c0_0] : memref<64x2xf32, #tpu.memory_space<vmem>>, vector<64x2xf32>
    %1 = vector.extract_strided_slice %0 {offsets = [0, 0], sizes = [64, 1], strides = [1, 1]} : vector<64x2xf32> to vector<64x1xf32>
    %cst = arith.constant 0.000000e+00 : f32
    %2 = vector.broadcast %cst : f32 to vector<64x1xf32>
    %3 = arith.cmpf one, %1, %2 : vector<64x1xf32>
    %4 = arith.extui %3 : vector<64x1xi1> to vector<64x1xi32>
    %5 = arith.sitofp %4 : vector<64x1xi32> to vector<64x1xf32>
    %c0_1 = arith.constant 0 : index
    %c0_2 = arith.constant 0 : index
    %6 = vector.load %arg3[%c0_1, %c0_2] : memref<2x128xf32, #tpu.memory_space<vmem>>, vector<2x128xf32>
    %cst_3 = arith.constant dense<0.000000e+00> : vector<64x128xf32>
    %7 = tpu.matmul %0, %6, %cst_3 {dimension_numbers = #tpu.dot_dimension_numbers<[1], [0], [0], [1], [0, 0, 1, 1], [], []>} : vector<64x2xf32>, vector<2x128xf32>, vector<64x128xf32> -> vector<64x128xf32>
    %c0_4 = arith.constant 0 : index
    %c0_5 = arith.constant 0 : index
    %8 = vector.load %arg4[%c0_4, %c0_5] : memref<1x128xf32, #tpu.memory_space<vmem>>, vector<1x128xf32>
    %9 = vector.broadcast %8 : vector<1x128xf32> to vector<64x128xf32>
    %10 = arith.addf %7, %9 : vector<64x128xf32>
    %cst_6 = arith.constant 0.000000e+00 : f32
    %11 = vector.broadcast %cst_6 : f32 to vector<64x128xf32>
    %12 = arith.maximumf %10, %11 : vector<64x128xf32>
    %c0_7 = arith.constant 0 : index
    %c0_8 = arith.constant 0 : index
    %13 = vector.load %arg5[%c0_7, %c0_8] : memref<128x128xbf16, #tpu.memory_space<vmem>>, vector<128x128xbf16>
    %c0_9 = arith.constant 0 : index
    %c0_10 = arith.constant 0 : index
    %14 = vector.load %arg6[%c0_9, %c0_10] : memref<1x128xf32, #tpu.memory_space<vmem>>, vector<1x128xf32>
    %15 = arith.truncf %12 : vector<64x128xf32> to vector<64x128xbf16>
    %cst_11 = arith.constant dense<0.000000e+00> : vector<64x128xf32>
    %16 = tpu.matmul %15, %13, %cst_11 {dimension_numbers = #tpu.dot_dimension_numbers<[1], [0], [0], [1], [0, 0, 1, 1], [], []>} : vector<64x128xbf16>, vector<128x128xbf16>, vector<64x128xf32> -> vector<64x128xf32>
    %17 = vector.broadcast %14 : vector<1x128xf32> to vector<64x128xf32>
    %18 = arith.addf %16, %17 : vector<64x128xf32>
    %c0_12 = arith.constant 0 : index
    %c0_13 = arith.constant 0 : index
    %19 = vector.load %arg2[%c0_12, %c0_13] : memref<4x64xf32, #tpu.memory_space<vmem>>, vector<4x64xf32>
    %20 = vector.broadcast %5 : vector<64x1xf32> to vector<64x128xf32>
    %21 = arith.mulf %18, %20 : vector<64x128xf32>
    %cst_14 = arith.constant dense<0.000000e+00> : vector<4x128xf32>
    %22 = tpu.matmul %19, %21, %cst_14 {dimension_numbers = #tpu.dot_dimension_numbers<[1], [0], [0], [1], [0, 0, 1, 1], [], []>} : vector<4x64xf32>, vector<64x128xf32>, vector<4x128xf32> -> vector<4x128xf32>
    %c0_15 = arith.constant 0 : index
    %c0_16 = arith.constant 0 : index
    %23 = vector.load %arg2[%c0_15, %c0_16] : memref<4x64xf32, #tpu.memory_space<vmem>>, vector<4x64xf32>
    %cst_17 = arith.constant dense<0.000000e+00> : vector<4x1xf32>
    %24 = tpu.matmul %23, %5, %cst_17 {dimension_numbers = #tpu.dot_dimension_numbers<[1], [0], [0], [1], [0, 0, 1, 1], [], []>} : vector<4x64xf32>, vector<64x1xf32>, vector<4x1xf32> -> vector<4x1xf32>
    %cst_18 = arith.constant 1.000000e+00 : f32
    %25 = vector.broadcast %cst_18 : f32 to vector<4x1xf32>
    %26 = arith.maximumf %24, %25 : vector<4x1xf32>
    %27 = vector.broadcast %26 : vector<4x1xf32> to vector<4x128xf32>
    %28 = arith.divf %22, %27 : vector<4x128xf32>
    %c0_19 = arith.constant 0 : index
    %c0_20 = arith.constant 0 : index
    %c0_21 = arith.constant 0 : index
    %29 = vector.load %arg9[%c0_19, %c0_20, %c0_21] : memref<1x4x128xf32, #tpu.memory_space<vmem>>, vector<1x4x128xf32>
    %30 = vector.shape_cast %29 : vector<1x4x128xf32> to vector<4x128xf32>
    %31 = vector.shape_cast %28 : vector<4x128xf32> to vector<1x4x128xf32>
    tpu.vector_store %arg9[%c0_19, %c0_20, %c0_21], %31 {strides = array<i32>} : memref<1x4x128xf32, #tpu.memory_space<vmem>>, vector<1x4x128xf32>,
    %c0_22 = arith.constant 0 : index
    %c0_23 = arith.constant 0 : index
    %32 = vector.load %arg7[%c0_22, %c0_23] : memref<128x128xf32, #tpu.memory_space<vmem>>, vector<128x128xf32>
    %cst_24 = arith.constant dense<0.000000e+00> : vector<4x128xf32>
    %33 = tpu.matmul %28, %32, %cst_24 {dimension_numbers = #tpu.dot_dimension_numbers<[1], [0], [0], [1], [0, 0, 1, 1], [], []>} : vector<4x128xf32>, vector<128x128xf32>, vector<4x128xf32> -> vector<4x128xf32>
    %c0_25 = arith.constant 0 : index
    %c0_26 = arith.constant 0 : index
    %34 = vector.load %arg8[%c0_25, %c0_26] : memref<1x128xf32, #tpu.memory_space<vmem>>, vector<1x128xf32>
    %35 = vector.broadcast %34 : vector<1x128xf32> to vector<4x128xf32>
    %36 = arith.addf %33, %35 : vector<4x128xf32>
    %c0_27 = arith.constant 0 : index
    %c0_28 = arith.constant 0 : index
    %c0_29 = arith.constant 0 : index
    %37 = vector.load %arg10[%c0_27, %c0_28, %c0_29] : memref<1x4x128xf32, #tpu.memory_space<vmem>>, vector<1x4x128xf32>
    %38 = vector.shape_cast %37 : vector<1x4x128xf32> to vector<4x128xf32>
    %39 = vector.shape_cast %36 : vector<4x128xf32> to vector<1x4x128xf32>
    tpu.vector_store %arg10[%c0_27, %c0_28, %c0_29], %39 {strides = array<i32>} : memref<1x4x128xf32, #tpu.memory_space<vmem>>, vector<1x4x128xf32>,
    return
  }
  func.func @transform_0(%arg0: i32) -> (i32, i32) {
    %c0_i32 = arith.constant 0 : i32
    %c0_i32_0 = arith.constant 0 : i32
    return %arg0, %c0_i32 : i32, i32
  }
  func.func @transform_1(%arg0: i32) -> (i32, i32) {
    %c0_i32 = arith.constant 0 : i32
    %c0_i32_0 = arith.constant 0 : i32
    %c0_i32_1 = arith.constant 0 : i32
    return %c0_i32, %c0_i32_0 : i32, i32
  }
  func.func @transform_2(%arg0: i32) -> (i32, i32) {
    %c0_i32 = arith.constant 0 : i32
    %c0_i32_0 = arith.constant 0 : i32
    %c0_i32_1 = arith.constant 0 : i32
    return %c0_i32, %c0_i32_0 : i32, i32
  }
  func.func @transform_3(%arg0: i32) -> (i32, i32) {
    %c0_i32 = arith.constant 0 : i32
    %c0_i32_0 = arith.constant 0 : i32
    %c0_i32_1 = arith.constant 0 : i32
    return %c0_i32, %c0_i32_0 : i32, i32
  }
  func.func @transform_4(%arg0: i32) -> (i32, i32) {
    %c0_i32 = arith.constant 0 : i32
    %c0_i32_0 = arith.constant 0 : i32
    %c0_i32_1 = arith.constant 0 : i32
    return %c0_i32, %c0_i32_0 : i32, i32
  }
  func.func @transform_5(%arg0: i32) -> (i32, i32) {
    %c0_i32 = arith.constant 0 : i32
    %c0_i32_0 = arith.constant 0 : i32
    %c0_i32_1 = arith.constant 0 : i32
    return %c0_i32, %c0_i32_0 : i32, i32
  }
  func.func @transform_6(%arg0: i32) -> (i32, i32) {
    %c0_i32 = arith.constant 0 : i32
    %c0_i32_0 = arith.constant 0 : i32
    %c0_i32_1 = arith.constant 0 : i32
    return %c0_i32, %c0_i32_0 : i32, i32
  }
  func.func @transform_7(%arg0: i32) -> (i32, i32) {
    %c0_i32 = arith.constant 0 : i32
    %c0_i32_0 = arith.constant 0 : i32
    %c0_i32_1 = arith.constant 0 : i32
    return %c0_i32, %c0_i32_0 : i32, i32
  }
  func.func @transform_8(%arg0: i32) -> (i32, i32, i32) {
    %c0_i32 = arith.constant 0 : i32
    %c0_i32_0 = arith.constant 0 : i32
    %c0_i32_1 = arith.constant 0 : i32
    return %arg0, %c0_i32, %c0_i32_0 : i32, i32, i32
  }
  func.func @transform_9(%arg0: i32) -> (i32, i32, i32) {
    %c0_i32 = arith.constant 0 : i32
    %c0_i32_0 = arith.constant 0 : i32
    %c0_i32_1 = arith.constant 0 : i32
    return %arg0, %c0_i32, %c0_i32_0 : i32, i32, i32
  }
}

</mosaic_0001>

<bundles_post_ra>
// kernel: tpu_custom_call.1
= control target key start
LH: loop header
LB: loop body
LE: loop exit
PB: predicated region body
PF: predicated region fallthrough
CT: control target
= control target key end

     0   :  { %s1988_s0 = inlined_call_operand.vmem [shape: f32[128,2], index: 0, kind: input, shape index: {}]   ;;  %s1989_s1 = inlined_call_operand.vmem [shape: f32[4,64], index: 1, kind: input, shape index: {}]   ;;  %s1990_s2 = inlined_call_operand.vmem [shape: f32[2,128], index: 2, kind: input, shape index: {}]   ;;  %s1991_s3 = inlined_call_operand.vmem [shape: f32[1,128], index: 3, kind: input, shape index: {}]   ;;  %s1992_s4 = inlined_call_operand.hbm [shape: bf16[128,128], index: 4, kind: input, shape index: {}]   ;;  %s1993_s5 = inlined_call_operand.vmem [shape: f32[1,128], index: 5, kind: input, shape index: {}]   ;;  %s1994_s6 = inlined_call_operand.vmem [shape: f32[128,128], index: 6, kind: input, shape index: {}]   ;;  %s1995_s7 = inlined_call_operand.vmem [shape: f32[1,128], index: 7, kind: input, shape index: {}]   ;;  %s1996_s8 = inlined_call_operand.hbm [shape: f32[2,4,128], index: 8, kind: output, shape index: {0}]   ;;  %s1997_s9 = inlined_call_operand.hbm [shape: f32[2,4,128], index: 9, kind: output, shape index: {1}]  }
   0x1   :  { %2003 = sst [smem:[#allocation11_spill]] %s1988_s0 }
   0x2   :  { %15 = vsyncpa [#allocation3], 0 }
   0x3   :  { %16 = vsyncpa [#allocation4], 0 }
   0x4   :  { %18 = vsyncpa [#allocation4 + $0x1], 0 }
   0x5   :  { %19 = vsyncpa [#allocation7], 0 }
   0x6   :  { %21 = vsyncpa [#allocation7 + $0x1], 0  ;;  %s1664_s30 = smov 0   ;;  %s1666_s10 = smov 0  }
   0x7   :  { %s1668_s11 = smov 0   ;;  %s1670_s12 = smov 0  }
   0x8 LB: > { %s1685_s13 = sadd.s32 4294967295, %s1602_s12   ;;  %s1113_s14 = sadd.s32 4294967294, %s1602_s12   ;;  %s1602_s12 = sphi %s1670_s12, %s2021_s12   ;;  %s1598_s11 = sphi %s1668_s11, %s2020_s11   ;;  %s1594_s10 = sphi %s1666_s10, %s2019_s10   ;;  %s1590_s30 = sphi %s1664_s30, %s2018_s30  }
   0x9   : > { %s1689_s15 = sadd.s32 1, %s1602_s12   ;;  %s207_s16 = sadd.s32 1, %s1598_s11 }
   0xa   : > { %s204_s17 = ssub.s32 %s1602_s12, %s1689_s15  ;;  %p217_p0 = scmp.ne.s32.totalorder %s1598_s11, %s1594_s10 }
   0xb   : > { %p205_p1 = scmp.eq.s32.totalorder %s204_s17, 0  ;;  %p218_p2 = scmp.eq.s32.totalorder %s1685_s13, 1 }
   0xc   : > { %p223_p3 = scmp.ne.s32.totalorder %s1594_s10, %s1590_s30  ;;  %p224_p4 = scmp.eq.s32.totalorder %s1113_s14, 1 }
   0xd   : > { %s1700_s18 = scalar_select %p205_p1, %s1598_s11, %s207_s16  }
   0xe   : > { %p1702_p5 = por %p218_p2, %p217_p0  ;;  %p1706_p6 = por %p224_p4, %p223_p3 }
   0xf   : > { %p1114_p7 = scmp.ge.s32.totalorder %s1602_s12, 1  ;;  %p257_p8 = scmp.lt.s32.totalorder %s1602_s12, 3 }
  0x10   : > { %s2004_s19 = scalar_select %p1702_p5, 1, 0 }
  0x11   : > { %s2005_s20 = scalar_select %p1706_p6, 1, 0 }
  0x12   : > { %p1998_p9 = scmp.eq.s32.totalorder %s1685_s13, 0  ;;  %p1713_p10 = pnand %p1114_p7, %p257_p8 }
  0x13   : > { %s1604_s22 = smov [#allocation2]   ;;  %s1476_s27 = scalar_lea.hbm %s1992_s4, 1024 }
  0x14   : > { %s2006_s21 = scalar_select %p1713_p10, 1, 0 }
  0x15   : > { %s278_s23 = sshll.u32 %s1604_s22, 4  ;;  %p1390_p11 = pneg %p1713_p10  ;;  %s279_s23 = int_to_ptr.vmem [resolvable:$true] %s278_s23 }
  0x16   : > { %p1477_p13 = scmp.ne.s32.totalorder %s1992_s4, %s1476_s27  ;;  %p1483_p3 = scmp.lt.u32.totalorder %s1476_s27, %s1992_s4 }
  0x17   : > { %p1721_p12 = pnand %p1998_p9, %p1390_p11 }
  0x19   : > { %p1478_p0 = pneg %p1721_p12 }
  0x1b   : > { %p1479_p1 = pnand %p1478_p0, %p1477_p13 }
  0x1d   : > { %p1480_p2 = pneg %p1479_p1 }
  0x1f   : > { %p1485_p4 = pnand %p1483_p3, %p1480_p2 }
  0x21   : > { %1488 = shalt.err (!%p1485_p4)
}
  0x22   : > { %s1489_s17 = scalar_lea.vmem %s279_s23, 1024  ;;  %p1497_p9 = scmp.lt.s32.totalorder %s279_s23, %s279_s23 }
  0x23   : > { %p1490_p7 = scmp.ne.s32.totalorder %s279_s23, %s1489_s17  ;;  %p1498_p6 = scmp.lt.s32.totalorder %s1489_s17, %s1489_s17 }
  0x25   : > { %p1492_p8 = pnand %p1490_p7, %p1478_p0  ;;  %p1499_p5 = por %p1498_p6, %p1497_p9 }
  0x27   : > { %p1493_p11 = pneg %p1492_p8 }
  0x29   : > { %p1500_p10 = pnand %p1499_p5, %p1493_p11 }
  0x2b   : > { %1503 = shalt.err (!%p1500_p10)
}
  0x2c   : > { %s1605_s22 = smov 64   ;;  %s1606_s25 = smov 4  }
  0x2d   : > { %1393 = dma.hbm_to_vmem [thread:$0]  (!%p1721_p12), %s1992_s4, 1024, %s279_s23, [#allocation3], %s1605_s22, %s1605_s22, %s1606_s25  }
  0x2e   : > { %p2008_p13 = scmp.ne.s32.totalorder %s2006_s21, 0 }
  0x2f   : > { %p2009_p1 = scmp.eq.s32.totalorder (!%p2008_p13), %s1685_s13, 0 }
  0x30   : > { %312 = sbr.rel (%p2008_p13) target bundleno = 1123 (0x463), region = 52 }
  0x37   : > { %1577 = dma.done.wait (%p2009_p1), [#allocation3], 1024   ;;  %p2010_p0 = pmov %p2009_p1 }
  0x38   : > { %s1121_s27 = sshll.u32 %s1685_s13, 3  ;;  %vm425_vm0 = vcmask 1041408   ;;  %vm400_vm1 = vcmask 15360   ;;  %s2011_s0 = sld [smem:[#allocation11_spill]]  ;;  %v392_v0 = vld [vmem:[%s1990_s2] sm:$0x3] }
  0x39   : > { %1579 = vsyncadd (%p2010_p0), [#allocation3], 4294966272  ;;  %p354_p5 = scmp.lt.s32.totalorder %s1121_s27, 15  ;;  %1223 = vmatprep.subr.msk.mxu0 %vm425_vm0, %v392_v0  ;;  %v1466_v5 = vld [vmem:[#allocation2] sm:$0xff]   ;;  %v1467_v7 = vld [vmem:[#allocation2 + $0x8] sm:$0xff]   ;;  %v1607_v17 = vmov 0  }
  0x3a   : > { %1224 = vmatpush3.msk.msra.mxu0 %vm425_vm0, %v392_v0  ;;  %1237 = vmatprep.subr.bf16.mxu1 %v1466_v5  ;;  %v1468_v10 = vld [vmem:[#allocation2 + $0x10] sm:$0xff]   ;;  %v1469_v12 = vld [vmem:[#allocation2 + $0x18] sm:$0xff]   ;;  %v1470_v13 = vld [vmem:[#allocation2 + $0x20] sm:$0xff]   ;;  %v1608_v18 = vmov 0.0   ;;  %v1609_v61 = vmov 0.0|0.0   ;;  %vm1610_vm11 = vmmov 0  }
  0x3b   : > { %s2023_s27 = smov (!%p354_p5, %s1121_s27), 15  ;;  %1238 = vmatpush3.bf16.msra.mxu1 %v1466_v5  ;;  %v1471_v14 = vld [vmem:[#allocation2 + $0x28] sm:$0xff]   ;;  %v1472_v15 = vld [vmem:[#allocation2 + $0x30] sm:$0xff]   ;;  %v1473_v16 = vld [vmem:[#allocation2 + $0x38] sm:$0xff]   ;;  %1444 = vset.pattern.permute.xlu0 %v1607_v17  ;;  %vm731_vm12 = vcmask 523264   ;;  %s1904_s25 = sand.u32 1, %s1594_s10  }
  0x3c   : > { %s1122_s29 = sshll.u32 %s2023_s27, 3  ;;  %1239 = vmatprep.subr.bf16.mxu1 %v1467_v7  ;;  %1455 = vset.pattern.permute.xlu1 %v1607_v17  ;;  %v1131_v32 = vld [vmem:[%s1991_s3] ss:$0 sm:$0xff]  ;;  %v889_v23 = vld [vmem:[%s1994_s6 + $0x28] sm:$0xff]  ;;  %s2001_s26 = sshll.u32 %s1904_s25, 2 }
  0x3d   : > { %1334 = vmatprep.subr.bf16.mxu0 %v1609_v61  ;;  %v1141_v63 = vld [vmem:[%s1993_s5] ss:$0 sm:$0xff]  ;;  %s345_s28 = scalar_lea.vmem [#allocation5], %s2001_s26  ;;  %s2002_s27 = sshll.u32 %s1685_s13, 6 }
  0x3e   : > { %s357_s23 = scalar_lea.vmem %s2011_s0, %s1122_s29  ;;  %s997_s29 = sshll.u32 %s345_s28, 4  ;;  %s998_s29 = int_to_ptr.vmem [resolvable:$true] %s997_s29 }
  0x3f   : > { %v1754_v1 = vld [vmem:[%s357_s23] sm:$0xff]  ;;  %v1756_v2 = vld [vmem:[%s357_s23 + $0x8] sm:$0xff]  ;;  %v1760_v3 = vld [vmem:[%s357_s23 + $0x10] sm:$0xff]  ;;  %1240 = vmatpush3.bf16.msra.mxu1 %v1467_v7  ;;  %s979_s16 = scalar_lea.sflag [#allocation4], %s1904_s25  ;;  %s1504_s21 = scalar_lea.vmem %s998_s29, 64 }
  0x40   : > { %1225 = vmatprep.mubr.msk.f32.mxu0 %vm400_vm1, %v1754_v1  ;;  %v1764_v4 = vld [vmem:[%s357_s23 + $0x18] sm:$0xff]  ;;  %v364_v6 = vld [vmem:[%s357_s23 + $0x20] sm:$0xff]  ;;  %v365_v8 = vld [vmem:[%s357_s23 + $0x28] sm:$0xff]  ;;  %1241 = vmatprep.subr.bf16.mxu1 %v1468_v10  ;;  %vm368_vm2 = vcmp.ne.f32.partialorder %v1754_v1, 0.0  ;;  %vm369_vm3 = vcmp.ne.f32.partialorder %v1756_v2, 0.0  ;;  %vm370_vm4 = vcmp.ne.f32.partialorder %v1760_v3, 0.0  ;;  %p1505_p6 = scmp.ne.s32.totalorder %s998_s29, %s1504_s21 }
  0x41   : > { %1226 = vmatmul.mubr.msk.f32.vlgmr.msra.gmra.mrb[0].mxu0 %vm400_vm1, %v1756_v2  ;;  %v1770_v9 = vld [vmem:[%s357_s23 + $0x30] sm:$0xff]  ;;  %v1776_v11 = vld [vmem:[%s357_s23 + $0x38] sm:$0xff]  ;;  %vm371_vm5 = vcmp.ne.f32.partialorder %v1764_v4, 0.0  ;;  %vm372_vm8 = vcmp.ne.f32.partialorder %v364_v6, 0.0  ;;  %vm373_vm9 = vcmp.ne.f32.partialorder %v365_v8, 0.0  ;;  %v1123_v19 = vsel %vm368_vm2, 1.0, %v1608_v18  ;;  %vm1347_vm13 = vmpackc.low %vm369_vm3, %vm368_vm2  ;;  %s1915_s23 = scalar_lea.hbm %s1996_s8, %s2002_s27 }
  0x42   : > { %1228 = vmatprep.mubr.msk.f32.mxu0 %vm400_vm1, %v1760_v3  ;;  %vm374_vm6 = vcmp.ne.f32.partialorder %v1770_v9, 0.0  ;;  %vm375_vm7 = vcmp.ne.f32.partialorder %v1776_v11, 0.0  ;;  %v1124_v20 = vsel %vm369_vm3, 1.0, %v1608_v18  ;;  %v1125_v21 = vsel %vm370_vm4, 1.0, %v1608_v18  ;;  %vm1798_vm10 = vmpackc.low %vm373_vm9, %vm372_vm8  ;;  %v884_v1 = vld [vmem:[%s1994_s6] sm:$0xff]  ;;  %v885_v2 = vld [vmem:[%s1994_s6 + $0x8] sm:$0xff] }
  0x43   : > { %1242 = vmatpush3.bf16.msra.mxu1 %v1468_v10  ;;  %v1126_v22 = vsel %vm371_vm5, 1.0, %v1608_v18  ;;  %v1445_v24 = vpack.i.bf16 %v1124_v20, %v1123_v19  ;;  %v1127_v25 = vsel %vm372_vm8, 1.0, %v1608_v18  ;;  %v1128_v26 = vsel %vm373_vm9, 1.0, %v1608_v18  ;;  %vm1350_vm14 = vmpackc.low %vm371_vm5, %vm370_vm4  ;;  %v886_v3 = vld [vmem:[%s1994_s6 + $0x10] sm:$0xff]  ;;  %p2014_p9 = scmp.ne.s32.totalorder %s2004_s19, 0  ;;  %s1612_s17 = smov [#allocation5]  }
  0x44   : > { %1243 = vmatprep.subr.bf16.mxu1 %v1469_v12  ;;  %v1456_v27 = vpack.i.bf16 %v1128_v26, %v1127_v25  ;;  %v1129_v28 = vsel %vm374_vm6, 1.0, %v1608_v18  ;;  %v1130_v29 = vsel %vm375_vm7, 1.0, %v1608_v18  ;;  %v1450_v30 = vpack.i.bf16 %v1126_v22, %v1125_v21  ;;  %vm1356_vm15 = vmpackc.low %vm375_vm7, %vm374_vm6  ;;  %s1508_s22 = sshll.u32 %s1612_s17, 4  ;;  %s1509_s22 = int_to_ptr.vmem [resolvable:$false] %s1508_s22 }
  0x45   : > { %1229 = vmatmul.mubr.msk.f32.gmra.mrb[2].mxu0 %vm400_vm1, %v1764_v4  ;;  %1446 = vperm.xlu0 %1444, %v1445_v24   ;;  %v1461_v31 = vpack.i.bf16 %v1130_v29, %v1129_v28  ;;  %v1359_v4 = vpack.c.bf16 %v885_v2, %v884_v1  ;;  %p1506_p10 = pnand %p1505_p6, %p2014_p9  ;;  %s1510_s26 = scalar_lea.vmem %s1509_s22, 128 }
  0x46   : > { %1231 = vmatprep.mubr.msk.f32.mxu0 %vm400_vm1, %v364_v6  ;;  %1457 = vperm.xlu1 %1455, %v1456_v27   ;;  %p1511_p2 = scmp.lt.s32.totalorder %s998_s29, %s1509_s22  ;;  %p1512_p3 = scmp.lt.s32.totalorder %s1510_s26, %s1504_s21 }
  0x47   : > { %1244 = vmatpush3.bf16.msra.mxu1 %v1469_v12  ;;  %p1507_p12 = pneg %p1506_p10 }
  0x48   : > { %1245 = vmatprep.subr.bf16.mxu1 %v1470_v13  ;;  %p1513_p4 = por %p1512_p3, %p1511_p2 }
  0x49   : > { %1232 = vmatmul.mubr.msk.f32.gmra.mrb[4].mxu0 %vm400_vm1, %v365_v8  ;;  %1451 = vperm.xlu0 %1444, %v1450_v30  }
  0x4a   : > { %1234 = vmatprep.mubr.msk.f32.mxu0 %vm400_vm1, %v1770_v9  ;;  %1462 = vperm.xlu1 %1455, %v1461_v31   ;;  %v887_v9 = vld [vmem:[%s1994_s6 + $0x18] sm:$0xff]  ;;  %p1514_p7 = pnand %p1513_p4, %p1507_p12 }
  0x4b   : > { %1246 = vmatpush3.bf16.msra.mxu1 %v1470_v13 }
  0x4c   : > { %1247 = vmatprep.subr.bf16.mxu1 %v1471_v14 }
  0x4d   : > { %1235 = vmatmul.mubr.msk.f32.gmra.mrb[6].mxu0 %vm400_vm1, %v1776_v11  ;;  %v1362_v11 = vpack.c.bf16 %v887_v9, %v886_v3 }
  0x4e   : > { %1277 = vmatprep.mubr.msk.f32.mxu0 %vm1610_vm11, %v1608_v18 }
  0x4f   : > { %1248 = vmatpush3.bf16.msra.mxu1 %v1471_v14 }
  0x50   : > { %1249 = vmatprep.subr.bf16.mxu1 %v1472_v15 }
  0x53   : > { %1250 = vmatpush3.bf16.msra.mxu1 %v1472_v15 }
  0x54   : > { %1251 = vmatprep.subr.bf16.mxu1 %v1473_v16 }
  0x57   : > { %1252 = vmatpush3.bf16.msra.mxu1 %v1473_v16 }
  0x58   : > { %1358 = vmatprep.subr.bf16.mxu1 %v1609_v61 }
  0xc4   : > { %v1447_v62 = vpop.permute.xlu0 %1446 }
  0xc5   : > { %v1458_v6 = vpop.permute.xlu1 %1457  ;;  %v1449_v13 = vunpack.i.h.bf16 %v1447_v62  ;;  %v1448_v14 = vunpack.i.l.bf16 %v1447_v62  ;;  %v894_v62 = vld [vmem:[%s1994_s6 + $0x50] sm:$0xff] }
  0xc8   : > { %v1452_v0 = vpop.permute.xlu0 %1451 }
  0xc9   : > { %v1454_v8 = vunpack.i.h.bf16 %v1452_v0  ;;  %v1453_v10 = vunpack.i.l.bf16 %v1452_v0  ;;  %v1463_v26 = vpop.permute.xlu1 %1462 }
  0xca   : > { %v1465_v30 = vunpack.i.h.bf16 %v1463_v26  ;;  %v1464_v31 = vunpack.i.l.bf16 %v1463_v26 }
 0x114   : > { %v1227_v33 = vpop.f32.mrb[0].mxu0 }
 0x115   : > { %v501_v34 = vadd.f32 %v1227_v33, %v1131_v32  ;;  %v495_v35 = vpop.f32.mrb[1].mxu0 }
 0x116   : > { %v496_v36 = vadd.f32 %v1131_v32, %v495_v35  ;;  %v1459_v35 = vunpack.i.l.bf16 %v1458_v6 }
 0x117   : > { %v535_v37 = vmax.f32 %v501_v34, 0.0  ;;  %v1460_v34 = vunpack.i.h.bf16 %v1458_v6  ;;  %v897_v6 = vld [vmem:[%s1994_s6 + $0x68] sm:$0xff] }
 0x118   : > { %v534_v38 = vmax.f32 %v496_v36, 0.0  ;;  %v1230_v39 = vpop.f32.mrb[2].mxu0 }
 0x119   : > { %v511_v40 = vadd.f32 %v1230_v39, %v1131_v32  ;;  %v505_v41 = vpop.f32.mrb[3].mxu0 }
 0x11a   : > { %v506_v42 = vadd.f32 %v1131_v32, %v505_v41  ;;  %v559_v43 = vpack.c.bf16 %v535_v37, %v534_v38 }
 0x11b   : > { %v537_v44 = vmax.f32 %v511_v40, 0.0 }
 0x11c   : > { %v536_v45 = vmax.f32 %v506_v42, 0.0  ;;  %v1233_v46 = vpop.f32.mrb[4].mxu0  ;;  %1253 = vmatprep.mubr.bf16.mxu1 %v559_v43 }
 0x11d   : > { %v521_v47 = vadd.f32 %v1233_v46, %v1131_v32  ;;  %v515_v48 = vpop.f32.mrb[5].mxu0 }
 0x11e   : > { %v560_v49 = vpack.c.bf16 %v537_v44, %v536_v45  ;;  %v516_v50 = vadd.f32 %v1131_v32, %v515_v48  ;;  %v1611_v48 = vmov 1.0|1.0  }
 0x11f   : > { %v539_v51 = vmax.f32 %v521_v47, 0.0  ;;  %v682_v47 = vld [vmem:[%s1989_s1] sm:$0xf] }
 0x120   : > { %v538_v52 = vmax.f32 %v516_v50, 0.0  ;;  %v1236_v53 = vpop.f32.mrb[6].mxu0  ;;  %1254 = vmatmul.mubr.bf16.vlgmr.msra.gmra.mrb[0].mxu1 %v560_v49  ;;  %v890_v50 = vld [vmem:[%s1994_s6 + $0x30] sm:$0xff] }
 0x121   : > { %v531_v54 = vadd.f32 %v1236_v53, %v1131_v32  ;;  %v525_v55 = vpop.f32.mrb[7].mxu0  ;;  %1360 = vmatpush3.bf16.msra.mxu1 %v1359_v4  ;;  %v892_v53 = vld [vmem:[%s1994_s6 + $0x40] sm:$0xff] }
 0x122   : > { %v561_v56 = vpack.c.bf16 %v539_v51, %v538_v52  ;;  %v526_v57 = vadd.f32 %v1131_v32, %v525_v55  ;;  %1361 = vmatprep.subr.bf16.mxu1 %v1609_v61  ;;  %v891_v51 = vld [vmem:[%s1994_s6 + $0x38] sm:$0xff] }
 0x123   : > { %v541_v58 = vmax.f32 %v531_v54, 0.0  ;;  %v1368_v52 = vpack.c.bf16 %v891_v51, %v890_v50  ;;  %v893_v54 = vld [vmem:[%s1994_s6 + $0x48] sm:$0xff] }
 0x124   : > { %v540_v59 = vmax.f32 %v526_v57, 0.0  ;;  %1257 = vmatprep.mubr.bf16.mxu1 %v561_v56  ;;  %v1371_v55 = vpack.c.bf16 %v893_v54, %v892_v53 }
 0x125   : > { %1363 = vmatpush3.bf16.msra.mxu1 %v1362_v11 }
 0x126   : > { %v562_v60 = vpack.c.bf16 %v541_v58, %v540_v59  ;;  %1364 = vmatprep.subr.bf16.mxu1 %v1609_v61 }
 0x128   : > { %1258 = vmatmul.mubr.bf16.gmra.mrb[4].mxu1 %v562_v60 }
 0x129   : > { %1331 = vmatprep.mubr.msk.f32.mxu1 %vm1610_vm11, %v1608_v18 }
 0x1f3   : > { %v1255_v5 = vpop.f32.mrb[0].mxu1 }
 0x1f4   : > { %v660_v7 = vadd.f32 %v1255_v5, %v1141_v63  ;;  %v651_v12 = vpop.f32.mrb[1].mxu1  ;;  %v896_v5 = vld [vmem:[%s1994_s6 + $0x60] sm:$0xff] }
 0x1f5   : > { %v652_v15 = vadd.f32 %v1141_v63, %v651_v12  ;;  %v1256_v16 = vpop.f32.mrb[2].mxu1 }
 0x1f6   : > { %v663_v17 = vadd.f32 %v1256_v16, %v1141_v63  ;;  %v654_v19 = vpop.f32.mrb[3].mxu1  ;;  %v725_v21 = vmul.f32 %v1453_v10, %v660_v7  ;;  %v1377_v7 = vpack.c.bf16 %v897_v6, %v896_v5  ;;  %v899_v10 = vld [vmem:[%s1994_s6 + $0x78] sm:$0xff] }
 0x1f7   : > { %v655_v20 = vadd.f32 %v1141_v63, %v654_v19  ;;  %v723_v24 = vmul.f32 %v1448_v14, %v652_v15 }
 0x1f8   : > { %v726_v22 = vmul.f32 %v1454_v8, %v663_v17  ;;  %v898_v8 = vld [vmem:[%s1994_s6 + $0x70] sm:$0xff] }
 0x1f9   : > { %v724_v25 = vmul.f32 %v1449_v13, %v655_v20  ;;  %v1380_v12 = vpack.c.bf16 %v899_v10, %v898_v8 }
 0x1fa   : > { %v1338_v27 = vpack.c.bf16 %v726_v22, %v725_v21 }
 0x1fb   : > { %v1335_v28 = vpack.c.bf16 %v724_v25, %v723_v24  ;;  %v1259_v29 = vpop.f32.mrb[4].mxu1 }
 0x1fc   : > { %v676_v32 = vadd.f32 %v1259_v29, %v1141_v63  ;;  %v667_v33 = vpop.f32.mrb[5].mxu1 }
 0x1fd   : > { %v668_v36 = vadd.f32 %v1141_v63, %v667_v33  ;;  %v1260_v37 = vpop.f32.mrb[6].mxu1  ;;  %1336 = vmatpush3.bf16.msra.mxu0 %v1335_v28 }
 0x1fe   : > { %v679_v38 = vadd.f32 %v1260_v37, %v1141_v63  ;;  %v670_v39 = vpop.f32.mrb[7].mxu1  ;;  %1337 = vmatprep.subr.bf16.mxu0 %v1609_v61  ;;  %v729_v41 = vmul.f32 %v1464_v31, %v676_v32 }
 0x1ff   : > { %v671_v40 = vadd.f32 %v1141_v63, %v670_v39  ;;  %v727_v43 = vmul.f32 %v1459_v35, %v668_v36  ;;  %v895_v63 = vld [vmem:[%s1994_s6 + $0x58] sm:$0xff] }
 0x200   : > { %v730_v42 = vmul.f32 %v1465_v30, %v679_v38  ;;  %v1374_v0 = vpack.c.bf16 %v895_v63, %v894_v62 }
 0x201   : > { %v728_v44 = vmul.f32 %v1460_v34, %v671_v40  ;;  %1339 = vmatpush3.bf16.msra.mxu0 %v1338_v27 }
 0x202   : > { %v1344_v45 = vpack.c.bf16 %v730_v42, %v729_v41  ;;  %1340 = vmatprep.subr.bf16.mxu0 %v1609_v61 }
 0x203   : > { %v1341_v46 = vpack.c.bf16 %v728_v44, %v727_v43 }
 0x205   : > { %1342 = vmatpush3.bf16.msra.mxu0 %v1341_v46 }
 0x206   : > { %1343 = vmatprep.subr.bf16.mxu0 %v1609_v61 }
 0x209   : > { %1345 = vmatpush3.bf16.msra.mxu0 %v1344_v45 }
 0x20a   : > { %1346 = vmatprep.subr.bf16.mxu0 %v1609_v61 }
 0x20c   : > { %1278 = vmatmul.mubr.msk.f32.vlgmr.msra.gmra.mrb[8].mxu0 %vm731_vm12, %v682_v47 }
 0x20d   : > { %1348 = vmatpush3.bf16.msk.msra.mxu0 %vm1347_vm13, %v1611_v48  ;;  %1296 = vmatprep.mubr.msk.f32.mxu0 %vm1610_vm11, %v1608_v18  ;;  %v888_v18 = vld [vmem:[%s1994_s6 + $0x20] sm:$0xff] }
 0x20e   : > { %1349 = vmatprep.subr.bf16.mxu0 %v1609_v61  ;;  %v1365_v49 = vpack.c.bf16 %v889_v23, %v888_v18 }
 0x210   : > { %1366 = vmatpush3.bf16.msra.mxu1 %v1365_v49 }
 0x211   : > { %1351 = vmatpush3.bf16.msk.msra.mxu0 %vm1350_vm14, %v1611_v48  ;;  %1367 = vmatprep.subr.bf16.mxu1 %v1609_v61 }
 0x212   : > { %1352 = vmatprep.subr.bf16.mxu0 %v1609_v61 }
 0x214   : > { %1369 = vmatpush3.bf16.msra.mxu1 %v1368_v52 }
 0x215   : > { %1354 = vmatpush3.bf16.msk.msra.mxu0 %vm1798_vm10, %v1611_v48  ;;  %1370 = vmatprep.subr.bf16.mxu1 %v1609_v61 }
 0x216   : > { %1355 = vmatprep.subr.bf16.mxu0 %v1609_v61 }
 0x218   : > { %1372 = vmatpush3.bf16.msra.mxu1 %v1371_v55 }
 0x219   : > { %1357 = vmatpush3.bf16.msk.msra.mxu0 %vm1356_vm15, %v1611_v48  ;;  %1373 = vmatprep.subr.bf16.mxu1 %v1609_v61 }
 0x21c   : > { %1297 = vmatmul.mubr.msk.f32.vlgmr.msra.gmra.mrb[10].mxu0 %vm731_vm12, %v682_v47  ;;  %1375 = vmatpush3.bf16.msra.mxu1 %v1374_v0 }
 0x21d   : > { %1376 = vmatprep.subr.bf16.mxu1 %v1609_v61 }
 0x220   : > { %1378 = vmatpush3.bf16.msra.mxu1 %v1377_v7 }
 0x221   : > { %1379 = vmatprep.subr.bf16.mxu1 %v1609_v61 }
 0x224   : > { %1381 = vmatpush3.bf16.msra.mxu1 %v1380_v12 }
 0x2df   : > { %v801_v56 = vpop.f32.mrb[8].mxu0 }
 0x2e0   : > { %v1279_v57 = vpop.f32.mrb[9].mxu0 }
 0x2ef   : > { %v871_v58 = vpop.f32.mrb[10].mxu0 }
 0x2f0   : > { %v875_v59 = vmax.f32 %v871_v58, 1.0  ;;  %v1298_v60 = vpop.f32.mrb[11].mxu0 }
 0x2f2   : > { %878 = vperm.xlu0 %1444, %v875_v59  }
 0x371   : > { %v879_v13 = vpop.permute.xlu0 %878 }
 0x372   : > { %1474 = vrcp.f32 %v879_v13 }
 0x37c   : > { %v1475_v61 = vpop.eup %1474 }
 0x37d   : > { %v882_v14 = vmul.f32 %v1475_v61, %v801_v56 }
 0x37f   : > { %1332 = vmatmul.mubr.f32.vlgmr.msra.gmra.mrb[8].mxu1 %v882_v14  ;;  %883 = vst [vmem:[%s345_s28] sm:$0xf] %v882_v14 }
 0x380   : > { %1517 = shalt.err (!%p1514_p7)
}
 0x381   : > { %s1518_s28 = scalar_lea.hbm %s1915_s23, 64  ;;  %s1522_s17 = scalar_lea.hbm %s1996_s8, 128 }
 0x382   : > { %p1519_p8 = scmp.ne.s32.totalorder %s1915_s23, %s1518_s28  ;;  %p1523_p1 = scmp.lt.u32.totalorder %s1915_s23, %s1996_s8 }
 0x383   : > { %p1524_p0 = scmp.lt.u32.totalorder %s1522_s17, %s1518_s28  ;;  %p1526_p6 = scmp.lt.u32.totalorder %s1518_s28, %s1915_s23 }
 0x384   : > { %p1520_p11 = pnand %p1519_p8, %p2014_p9 }
 0x385   : > { %p1525_p5 = por %p1524_p0, %p1523_p1 }
 0x386   : > { %p1521_p13 = pneg %p1520_p11 }
 0x387   : > { %p1527_p10 = por %p1526_p6, %p1525_p5 }
 0x389   : > { %p1528_p12 = pnand %p1527_p10, %p1521_p13 }
 0x38b   : > { %1531 = shalt.err (!%p1528_p12)
}
 0x38c   : > { %1386 = dma.vmem_to_hbm [thread:$0]  (%p2014_p9), %s998_s29, 64, %s1915_s23, %s979_s16   ;;  %v1160_v15 = vld [vmem:[%s1995_s7] ss:$0 sm:$0xff] }
 0x38d   : > { %s2015_s27 = sshll.u32 %s1904_s25, 2  ;;  %s2016_s28 = sshll.u32 %s1685_s13, 6 }
 0x38e   : > { %s352_s24 = scalar_lea.vmem [#allocation6], %s2015_s27  ;;  %s1945_s0 = scalar_lea.hbm %s1997_s9, %s2016_s28 }
 0x38f   : > { %s1010_s14 = sshll.u32 %s352_s24, 4  ;;  %s984_s29 = scalar_lea.sflag [#allocation7], %s1904_s25  ;;  %s1947_s14 = int_to_ptr.vmem [resolvable:$true] %s1010_s14 }
 0x390   : > { %s1532_s23 = scalar_lea.vmem %s1947_s14, 64  ;;  %s1613_s16 = smov [#allocation6]  }
 0x391   : > { %p1533_p2 = scmp.ne.s32.totalorder %s1947_s14, %s1532_s23  ;;  %s1536_s26 = sshll.u32 %s1613_s16, 4  ;;  %s1537_s26 = int_to_ptr.vmem [resolvable:$false] %s1536_s26 }
 0x392   : > { %s1538_s13 = scalar_lea.vmem %s1537_s26, 128  ;;  %p1539_p7 = scmp.lt.s32.totalorder %s1947_s14, %s1537_s26 }
 0x393   : > { %p1534_p3 = pnand %p1533_p2, %p2014_p9  ;;  %p1540_p8 = scmp.lt.s32.totalorder %s1538_s13, %s1532_s23 }
 0x395   : > { %p1535_p4 = pneg %p1534_p3  ;;  %p1541_p11 = por %p1540_p8, %p1539_p7 }
 0x397   : > { %p1542_p13 = pnand %p1541_p11, %p1535_p4 }
 0x452   : > { %v973_v16 = vpop.f32.mrb[8].mxu1 }
 0x453   : > { %v974_v17 = vadd.f32 %v1160_v15, %v973_v16  ;;  %v1333_v19 = vpop.f32.mrb[9].mxu1 }
 0x455   : > { %977 = vst [vmem:[%s352_s24] sm:$0xf] %v974_v17 }
 0x456   : > { %1545 = shalt.err (!%p1542_p13)
}
 0x457   : > { %s1546_s25 = scalar_lea.hbm %s1945_s0, 64  ;;  %s1550_s24 = scalar_lea.hbm %s1997_s9, 128 }
 0x458   : > { %p1547_p1 = scmp.ne.s32.totalorder %s1945_s0, %s1546_s25  ;;  %p1551_p6 = scmp.lt.u32.totalorder %s1945_s0, %s1997_s9 }
 0x459   : > { %p1552_p10 = scmp.lt.u32.totalorder %s1550_s24, %s1546_s25  ;;  %p1554_p2 = scmp.lt.u32.totalorder %s1546_s25, %s1945_s0 }
 0x45a   : > { %p1548_p0 = pnand %p1547_p1, %p2014_p9 }
 0x45b   : > { %p1553_p12 = por %p1552_p10, %p1551_p6 }
 0x45c   : > { %p1549_p5 = pneg %p1548_p0 }
 0x45d   : > { %p1555_p3 = por %p1554_p2, %p1553_p12 }
 0x45f   : > { %p1556_p4 = pnand %p1555_p3, %p1549_p5 }
 0x461   : > { %1559 = shalt.err (!%p1556_p4)
}
 0x462   : > { %1387 = dma.vmem_to_hbm [thread:$0]  (%p2014_p9), %s1947_s14, 64, %s1945_s0, %s984_s29  }
 0x463 PF: > { %p1403_p7 = scmp.ge.s32.totalorder %s1602_s12, 2  ;;  %s1022_s22 = sand.u32 1, %s1590_s30  }
 0x464   : > { %p2017_p8 = scmp.ne.s32.totalorder %s2005_s20, 0  ;;  %s1023_s23 = scalar_lea.sflag [#allocation4], %s1022_s22 }
 0x466   : > { %p1395_p11 = pnand %p1403_p7, %p2017_p8 }
 0x468   : > { %1581 = dma.done.wait (!%p1395_p11), %s1023_s23, 64  }
 0x469   : > { %1583 = vsyncadd (!%p1395_p11), %s1023_s23, 4294967232  ;;  %s1032_s16 = scalar_lea.sflag [#allocation7], %s1022_s22 }
 0x46a   : > { %1585 = dma.done.wait (!%p1395_p11), %s1032_s16, 64  }
 0x46b   : > { %1587 = vsyncadd (!%p1395_p11), %s1032_s16, 4294967232  ;;  %p24_p9 = scmp.ge.s32.totalorder %s1689_s15, 4   ;;  %s2018_s30 = smov %s1594_s10 }
 0x46c   : > { %s2019_s10 = smov %s1598_s11  ;;  %s2020_s11 = smov %s1700_s18 }
 0x46d   : > { %s2021_s12 = smov %s1689_s15  ;;  %26 = sbr.rel (!%p24_p9) target bundleno = 8 (0x8), region = 109 }
 0x474   :  { %1037 = vsyncpa [#allocation3], 1 }
 0x475   :  { %1039 = vsyncpa [#allocation3 + $0x1], 1 }
 0x476   :  { %1040 = vsyncpa [#allocation4], 1 }
 0x477   :  { %1042 = vsyncpa [#allocation4 + $0x1], 1 }
 0x478   :  { %1043 = vsyncpa [#allocation7], 1 }
 0x479   :  { %1045 = vsyncpa [#allocation7 + $0x1], 1 }

</bundles_post_ra>
